<compile_context>
chip_gen: v7x
topology: tpu7x:2x2x1
jax: 0.10.0
libtpu: 0.0.40
codegen_flags: <defaults>
</compile_context>

<pallas_src>
import jax
import jax.numpy as jnp
from jax.experimental import pallas as pl
from jax.experimental.pallas import tpu as pltpu

MODEL_DIM = 32
MAX_SEQ_LEN = 16
SEQ_LEN = 8
BATCH = 2
DROPOUT_RATE = 0.1  # identity at inference


# ---------------------------------------------------------------------------
# Host-side constant: the positional-encoding table (mirrors PyTorch __init__)
# ---------------------------------------------------------------------------
def build_position_encoding(max_seq_len: int, model_dim: int,
                            dtype=jnp.float32) -> jnp.ndarray:
    positions = jnp.arange(max_seq_len, dtype=jnp.float32)[:, None]            # (L, 1)
    div_term = 1.0 / jnp.power(
        10000.0, jnp.arange(0, model_dim, 2, dtype=jnp.float32) / model_dim)   # (D/2,)
    freq = positions * div_term                                                # (L, D/2)
    # Interleave: pe[:, 0::2] = sin(freq), pe[:, 1::2] = cos(freq)
    pe = jnp.stack([jnp.sin(freq), jnp.cos(freq)], axis=-1)                    # (L, D/2, 2)
    return pe.reshape(max_seq_len, model_dim).astype(dtype)                    # (L, D)


# ---------------------------------------------------------------------------
# Pallas kernel: lane-dense broadcast add (VPU only, HBM-bound at scale)
# ---------------------------------------------------------------------------
def pos_enc_kernel(x_ref, pe_ref, out_ref):
    # x_ref:  (rows_blk, S*D)   pe_ref: (1, S*D)   out_ref: (rows_blk, S*D)
    out_ref[...] = x_ref[...] + pe_ref[...]


# ---------------------------------------------------------------------------
# Wrapper: flatten to a lane-dense 2-D slab, row-blocked grid, reshape back
# ---------------------------------------------------------------------------
def positional_encoding(inputs: jnp.ndarray, pe_table: jnp.ndarray) -> jnp.ndarray:
    B, S, D = inputs.shape
    L, Dp = pe_table.shape
    assert S <= L and D == Dp, "seq_len must be <= max_seq_len and dims must match"

    dtype = inputs.dtype
    flat = S * D
    x2d = inputs.reshape(B, flat)                       # (B, S*D)  — lane-dense rows
    pe2d = pe_table[:S].reshape(1, flat).astype(dtype)  # (1, S*D)  — broadcast row

    # VMEM budget per grid step: x block + out block (aliased) + pe row,
    # each double-buffered by the auto-pipeline.  Stay well inside v7x's
    # 32 MiB scoped default (64 MiB physical); v5e/v6e have more headroom.
    itemsize = jnp.dtype(dtype).itemsize
    row_bytes = flat * itemsize
    vmem_budget = 16 << 20
    rows_cap = max(8, vmem_budget // (6 * row_bytes))

    if B <= rows_cap:
        row_block = B                                  # single block == full array dims
    else:
        row_block = min(1024, (rows_cap // 8) * 8)     # sublane-aligned block
    grid = (pl.cdiv(B, row_block),)

    out2d = pl.pallas_call(
        pos_enc_kernel,
        out_shape=jax.ShapeDtypeStruct((B, flat), dtype),
        grid=grid,
        in_specs=[
            pl.BlockSpec((row_block, flat), lambda i: (i, 0)),
            pl.BlockSpec((1, flat), lambda i: (0, 0)),   # PE row stays resident
        ],
        out_specs=pl.BlockSpec((row_block, flat), lambda i: (i, 0)),
        # in-place: output aliases the activation slab (op is x += pe)
        input_output_aliases={0: 0},
        compiler_params=pltpu.CompilerParams(
            dimension_semantics=("parallel",),           # v7x: shard rows across 2 TCs
        ),
    )(x2d, pe2d)

    # Dropout is identity at inference.
    return out2d.reshape(B, S, D)


# ---------------------------------------------------------------------------
# Pure-JAX reference (mirrors the PyTorch forward)
# ---------------------------------------------------------------------------
def reference(inputs: jnp.ndarray, pe_table: jnp.ndarray) -> jnp.ndarray:
    return inputs + pe_table[: inputs.shape[1]].astype(inputs.dtype)[None, :, :]


if __name__ == "__main__":
    pe_table = build_position_encoding(MAX_SEQ_LEN, MODEL_DIM, dtype=jnp.float32)

    key = jax.random.PRNGKey(0)
    inputs = jax.random.normal(key, (BATCH, SEQ_LEN, MODEL_DIM), dtype=jnp.float32)

    # Reference first (avoids any interaction with buffer donation/aliasing).
    ref = reference(inputs, pe_table)

    pos_enc = jax.jit(positional_encoding)
    out = pos_enc(inputs, pe_table)
    out = jax.block_until_ready(out)

    assert out.shape == (BATCH, SEQ_LEN, MODEL_DIM)
    assert jnp.allclose(out, ref, rtol=1e-6, atol=1e-6), float(jnp.max(jnp.abs(out - ref)))

    print("KERNEL_OK")
</pallas_src>

<mosaic_0001>
module attributes {stable_mosaic.version = 11 : i64} {
  func.func @pos_enc_kernel(%arg0: i32, %arg1: memref<2x256xf32, #tpu.memory_space<vmem>>, %arg2: memref<1x256xf32, #tpu.memory_space<vmem>>, %arg3: memref<2x256xf32, #tpu.memory_space<vmem>>) attributes {dimension_semantics = [#tpu.dimension_semantics<parallel>], iteration_bounds = array<i64: 1>, scalar_prefetch = 0 : i64, scratch_operands = 0 : i64, tpu.core_type = #tpu.core_type<tc>, window_params = [{transform_indices = @transform_0, window_bounds = array<i64: 2, 256>}, {pipeline_mode = #tpu.pipeline_mode<synchronous>, transform_indices = @transform_1, window_bounds = array<i64: 1, 256>}, {transform_indices = @transform_2, window_bounds = array<i64: 2, 256>}]} {
    %c0 = arith.constant 0 : index
    %c0_0 = arith.constant 0 : index
    %0 = vector.load %arg1[%c0, %c0_0] : memref<2x256xf32, #tpu.memory_space<vmem>>, vector<2x256xf32>
    %c0_1 = arith.constant 0 : index
    %c0_2 = arith.constant 0 : index
    %1 = vector.load %arg2[%c0_1, %c0_2] : memref<1x256xf32, #tpu.memory_space<vmem>>, vector<1x256xf32>
    %2 = vector.broadcast %1 : vector<1x256xf32> to vector<2x256xf32>
    %3 = arith.addf %0, %2 : vector<2x256xf32>
    %c0_3 = arith.constant 0 : index
    %c0_4 = arith.constant 0 : index
    %4 = vector.load %arg3[%c0_3, %c0_4] : memref<2x256xf32, #tpu.memory_space<vmem>>, vector<2x256xf32>
    tpu.vector_store %arg3[%c0_3, %c0_4], %3 {strides = array<i32>} : memref<2x256xf32, #tpu.memory_space<vmem>>, vector<2x256xf32>,
    return
  }
  func.func @transform_0(%arg0: i32) -> (i32, i32) {
    %c0_i32 = arith.constant 0 : i32
    %c0_i32_0 = arith.constant 0 : i32
    return %arg0, %c0_i32 : i32, i32
  }
  func.func @transform_1(%arg0: i32) -> (i32, i32) {
    %c0_i32 = arith.constant 0 : i32
    %c0_i32_0 = arith.constant 0 : i32
    %c0_i32_1 = arith.constant 0 : i32
    return %c0_i32, %c0_i32_0 : i32, i32
  }
  func.func @transform_2(%arg0: i32) -> (i32, i32) {
    %c0_i32 = arith.constant 0 : i32
    %c0_i32_0 = arith.constant 0 : i32
    return %arg0, %c0_i32 : i32, i32
  }
}

</mosaic_0001>

<bundles_post_ra>
// kernel: positional_encoding.1
= control target key start
LH: loop header
LB: loop body
LE: loop exit
PB: predicated region body
PF: predicated region fallthrough
CT: control target
= control target key end

     0   :  { %v14_v0 = vlaneseq  ;;  %v38_v1 = vmov 1983009808   ;;  %s63_s1 = inlined_call_operand.vmem [shape: f32[1,256], index: 1, kind: input, shape index: {}]   ;;  %s64_s0 = inlined_call_operand.vmem [shape: f32[2,256], index: 0, kind: input, shape index: {}, may-alias: {0,2}]   ;;  %s65_s2 = inlined_call_operand.vmem [shape: f32[2,256], index: 2, kind: output, shape index: {}, may-alias: {0,2}]  }
   0x1   :  { %v24_v2 = vunpack.c.l.s4 %v38_v1  ;;  %v12_v4 = vld [vmem:[%s63_s1] sm:$0x3] }
   0x2   :  { %v15_v3 = vshrl.u32 %v14_v0, 7  ;;  %v11_v12 = vld [vmem:[%s64_s0] sm:$0xf] }
   0x3   :  { %v25_v5 = vunpack.c.0.s8 %v24_v2 }
   0x4   :  { %v16_v6 = vsub.s32 0, %v15_v3  ;;  %v20_v7 = vsub.s32 1, %v15_v3 }
   0x5   :  { %v28_v10 = vsub.s32 %v25_v5, %v15_v3 }
   0x6   :  { %v17_v8 = vrot.slane %v12_v4, %v16_v6  ;;  %v21_v9 = vrot.slane %v12_v4, %v20_v7 }
   0x8   :  { %v22_v11 = vcombine.low %v17_v8, %v21_v9 }
   0xa   :  { %v29_v13 = vrot.slane %v22_v11, %v28_v10 }
   0xc   :  { %v31_v14 = vadd.f32 %v29_v13, %v11_v12 }
   0xe   :  { %32 = vst [vmem:[%s65_s2] sm:$0xf] %v31_v14 }

</bundles_post_ra>
